<compile_context>
chip_gen: v7x
topology: tpu7x:2x2x1
jax: 0.10.0
libtpu: 0.0.40
codegen_flags: <defaults>
</compile_context>

<pallas_src>
import functools

import jax
import jax.numpy as jnp
from jax.experimental import pallas as pl
from jax.experimental.pallas import tpu as pltpu


def _round_up(x, m):
    return (x + m - 1) // m * m


# ---------------------------------------------------------------------------
# Stage 1: projection producer.
#   Wh  = h @ W                      (bf16 MXU, f32 accum)
#   wh1 = sum(Wh * a1, axis=1)       ([rows, 1])
#   wh2 = sum(Wh * a2, axis=1)       ([rows, 1])
#   Wh[:, ones_col] := 1.0           (row-sum column for stage 2)
# ---------------------------------------------------------------------------
def _proj_kernel(h_ref, w_ref, a_ref, wh_ref, wh1_ref, wh2_ref, *, ones_col):
    wh = jnp.dot(
        h_ref[...].astype(jnp.bfloat16),
        w_ref[...].astype(jnp.bfloat16),
        preferred_element_type=jnp.float32,
    )
    a = a_ref[...]                               # [2, F_pad] (row 0 = a1, 1 = a2)
    wh1_ref[...] = jnp.sum(wh * a[0:1, :], axis=1, keepdims=True)
    wh2_ref[...] = jnp.sum(wh * a[1:2, :], axis=1, keepdims=True)
    # Inject a constant-1 column into an unused padded column: the stage-2
    # aggregation matmul then also produces the softmax row-sum on the MXU.
    col = jax.lax.broadcasted_iota(jnp.int32, wh.shape, 1)
    wh = jnp.where(col == ones_col, 1.0, wh)
    wh_ref[...] = wh.astype(wh_ref.dtype)


# ---------------------------------------------------------------------------
# Stage 2: tiled attention with online softmax, accumulating into out_ref.
# ---------------------------------------------------------------------------
def _attn_kernel(wh1_ref, wh2t_ref, adj_ref, wh_ref, out_ref, m_sc,
                 *, alpha, concat, ones_col):
    k = pl.program_id(1)

    @pl.when(k == 0)
    def _():
        m_sc[...] = jnp.full_like(m_sc, -jnp.inf)
        out_ref[...] = jnp.zeros_like(out_ref)

    # e = LeakyReLU(wh1 + wh2^T); wh2 is already a lane vector -> pure VPU add.
    e = wh1_ref[...] + wh2t_ref[...]             # [TQ,1] + [1,TK] -> [TQ,TK]
    e = jnp.maximum(e, alpha * e)                # LeakyReLU for alpha in (0,1)

    # Module semantics: real non-neighbors get the constant 1e-12 score.
    # Padded key columns are baked in the wrapper (adj=1, wh2^T=-1e30) so they
    # land here as huge negatives -> exactly zero softmax weight, no per-step
    # iota/compare/select needed.
    s = jnp.where(adj_ref[...] > 0, e, 1e-12)

    # Online softmax update; l = sum(p) arrives via the ones column of Wh.
    m_prev = m_sc[...]
    m_new = jnp.maximum(m_prev, jnp.max(s, axis=1, keepdims=True))
    corr = jnp.exp(m_prev - m_new)               # == 0 at k == 0 (m_prev = -inf)
    p = jnp.exp(s - m_new)
    out_ref[...] = corr * out_ref[...] + jnp.dot(
        p.astype(wh_ref.dtype), wh_ref[...], preferred_element_type=jnp.float32)
    m_sc[...] = m_new

    @pl.when(k == pl.num_programs(1) - 1)
    def _():
        acc = out_ref[...]
        l = acc[:, ones_col:ones_col + 1]        # softmax row-sum (ones column)
        hp = acc * pl.reciprocal(l, approx=True)
        if concat:
            hp = jnp.where(hp > 0, hp, jnp.exp(hp) - 1.0)   # ELU (alpha=1.0)
        out_ref[...] = hp.astype(out_ref.dtype)


def gat_forward(h, adj, W, a, *, alpha=0.2, concat=True):
    """Pallas implementation of GraphAttentionLayer.forward (eval mode)."""
    n, in_f = h.shape
    out_f = W.shape[1]

    # Reserve at least one padded column (index out_f) for the constant-1
    # row-sum column.
    f_pad = _round_up(out_f + 1, 128)
    ones_col = out_f

    # Tile plan:
    #  - N <= 512: single key tile, query axis split in two (n_q = 2) so the
    #    "parallel" axis can be megacore-sharded on v7x.
    #  - N  > 512: 512x512 tiles.  VMEM at 512 tiles (adj int8 x2 buf, Wh bf16
    #    x2 buf, f32 output block, [tq,tk] f32 e/s/p temporaries) is ~6 MiB,
    #    far under the 32 MiB limit set below on every TPU generation.
    if n <= 512:
        n_pad = _round_up(n, 16)
        tq = n_pad // 2
        tk = n_pad
    else:
        tq = tk = 512
        n_pad = _round_up(n, 512)

    # Stage-1 row block is decoupled from the attention tiles: few large steps.
    if n_pad % 1024 == 0:
        bs1 = 1024
    elif n_pad % 512 == 0:
        bs1 = 512
    else:
        bs1 = n_pad

    # ---- pad / retype inputs (wrapper-side layout plumbing) -----------------
    h_p = jnp.pad(h.astype(jnp.float32), ((0, n_pad - n), (0, 0)))
    W_p = jnp.pad(W.astype(jnp.float32), ((0, 0), (0, f_pad - out_f)))
    a12 = jnp.stack([a[:out_f, 0], a[out_f:, 0]], axis=0).astype(jnp.float32)
    a12 = jnp.pad(a12, ((0, 0), (0, f_pad - out_f)))            # [2, F_pad]
    # adj as int8; padded KEY columns are set to 1 so the in-kernel adj-select
    # keeps the (baked) -1e30 score instead of replacing it with 1e-12.
    adj_p = jnp.pad((adj > 0).astype(jnp.int8), ((0, n_pad - n), (0, 0)))
    adj_p = jnp.pad(adj_p, ((0, 0), (0, n_pad - n)), constant_values=1)

    # ---- stage 1: Wh / wh1 / wh2 -------------------------------------------
    proj_kernel = functools.partial(_proj_kernel, ones_col=ones_col)
    wh, wh1, wh2 = pl.pallas_call(
        proj_kernel,
        out_shape=(
            jax.ShapeDtypeStruct((n_pad, f_pad), jnp.bfloat16),
            jax.ShapeDtypeStruct((n_pad, 1), jnp.float32),
            jax.ShapeDtypeStruct((n_pad, 1), jnp.float32),
        ),
        grid_spec=pltpu.PrefetchScalarGridSpec(
            num_scalar_prefetch=0,
            grid=(n_pad // bs1,),
            in_specs=[
                pl.BlockSpec((bs1, in_f), lambda i: (i, 0)),
                pl.BlockSpec((in_f, f_pad), lambda i: (0, 0)),
                pl.BlockSpec((2, f_pad), lambda i: (0, 0)),
            ],
            out_specs=[
                pl.BlockSpec((bs1, f_pad), lambda i: (i, 0)),
                pl.BlockSpec((bs1, 1), lambda i: (i, 0)),
                pl.BlockSpec((bs1, 1), lambda i: (i, 0)),
            ],
        ),
        compiler_params=pltpu.CompilerParams(
            dimension_semantics=("parallel",),
            vmem_limit_bytes=32 * 1024 * 1024),
        cost_estimate=pl.CostEstimate(
            flops=int(2 * n_pad * in_f * f_pad),
            transcendentals=0,
            bytes_accessed=int(n_pad * in_f * 4 + in_f * f_pad * 4
                               + n_pad * f_pad * 2 + 2 * n_pad * 4),
        ),
    )(h_p, W_p, a12)

    # wh2 as a lane vector [1, N_pad]; padded key entries baked to -1e30 so
    # they receive exactly zero softmax weight (real non-neighbors keep 1e-12).
    wh2_t = wh2.reshape(1, n_pad)
    if n_pad > n:
        col_ids = jnp.arange(n_pad, dtype=jnp.int32)[None, :]
        wh2_t = jnp.where(col_ids < n, wh2_t, jnp.float32(-1e30))

    # ---- stage 2: tiled attention + aggregation ----------------------------
    n_q = n_pad // tq
    n_k = n_pad // tk
    attn_kernel = functools.partial(
        _attn_kernel,
        alpha=float(alpha),
        concat=bool(concat),
        ones_col=ones_col,
    )

    out_padded = pl.pallas_call(
        attn_kernel,
        out_shape=jax.ShapeDtypeStruct((n_pad, f_pad), jnp.float32),
        grid_spec=pltpu.PrefetchScalarGridSpec(
            num_scalar_prefetch=0,
            grid=(n_q, n_k),
            in_specs=[
                pl.BlockSpec((tq, 1), lambda i, k: (i, 0)),      # wh1
                pl.BlockSpec((1, tk), lambda i, k: (0, k)),      # wh2^T
                pl.BlockSpec((tq, tk), lambda i, k: (i, k)),     # adj (int8)
                pl.BlockSpec((tk, f_pad), lambda i, k: (k, 0)),  # Wh keys (bf16)
            ],
            out_specs=pl.BlockSpec((tq, f_pad), lambda i, k: (i, 0)),
            scratch_shapes=[
                pltpu.VMEM((tq, 1), jnp.float32),      # running max
            ],
        ),
        compiler_params=pltpu.CompilerParams(
            dimension_semantics=("parallel", "arbitrary"),
            vmem_limit_bytes=32 * 1024 * 1024),
        cost_estimate=pl.CostEstimate(
            flops=int(2 * n_pad * n_pad * f_pad),
            transcendentals=int(n_pad * n_pad),
            bytes_accessed=int(n_pad * n_pad                   # adj int8
                               + n_q * n_pad * f_pad * 2       # Wh re-read
                               + n_pad * f_pad * 4             # output
                               + 3 * n_pad * 4),
        ),
    )(wh1, wh2_t, adj_p, wh)

    return out_padded[:n, :out_f]


def _xavier_normal(key, shape, gain):
    fan_in, fan_out = shape[0], shape[1]
    std = gain * jnp.sqrt(2.0 / (fan_in + fan_out))
    return std * jax.random.normal(key, shape, dtype=jnp.float32)


if __name__ == "__main__":
    ALPHA = 0.2

    def run_case(case_key, n, in_f, out_f):
        k_h, k_adj, k_w, k_a = jax.random.split(case_key, 4)
        h = jax.random.normal(k_h, (n, in_f), dtype=jnp.float32)
        adj = (jax.random.uniform(k_adj, (n, n)) > 0.5).astype(jnp.float32)
        adj = jnp.maximum(adj, jnp.eye(n, dtype=jnp.float32))   # self loops
        W = _xavier_normal(k_w, (in_f, out_f), gain=1.414)
        a = _xavier_normal(k_a, (2 * out_f, 1), gain=1.414)

        out = jax.block_until_ready(
            gat_forward(h, adj, W, a, alpha=ALPHA, concat=True))

        # Pure-f32 reference (eval mode, no dropout), mirroring the module.
        wh = h @ W
        e = wh @ a[:out_f, :] + (wh @ a[out_f:, :]).T
        e = jnp.where(e > 0, e, ALPHA * e)
        att = jax.nn.softmax(jnp.where(adj > 0, e, 1e-12), axis=1)
        hp = att @ wh
        ref = jnp.where(hp > 0, hp, jnp.exp(hp) - 1.0)

        assert out.shape == (n, out_f)
        err = jnp.max(jnp.abs(out - ref))
        assert jnp.allclose(out, ref, atol=5e-2, rtol=5e-2), (
            f"N={n}: max abs err {err}")

    key = jax.random.PRNGKey(0)
    k1, k2, k3 = jax.random.split(key, 3)
    # Tiny case: small-N path, grid (2, 1).
    run_case(k1, 8, 16, 32)
    # Medium case: small-N path with key-column padding baked in (N_pad=304).
    run_case(k2, 300, 16, 32)
    # Larger case: 512x512 tiles, grid (2, 2) -> exercises the online-softmax
    # carry across key tiles and the padded last key tile.
    run_case(k3, 600, 16, 32)

    print("KERNEL_OK")
</pallas_src>

<mosaic_0001>
module attributes {stable_mosaic.version = 11 : i64} {
  func.func @_proj_kernel(%arg0: i32, %arg1: memref<16x16xf32, #tpu.memory_space<vmem>>, %arg2: memref<16x128xf32, #tpu.memory_space<vmem>>, %arg3: memref<2x128xf32, #tpu.memory_space<vmem>>, %arg4: memref<16x128xbf16, #tpu.memory_space<vmem>>, %arg5: memref<16x1xf32, #tpu.memory_space<vmem>>, %arg6: memref<16x1xf32, #tpu.memory_space<vmem>>) attributes {dimension_semantics = [#tpu.dimension_semantics<parallel>], iteration_bounds = array<i64: 1>, scalar_prefetch = 0 : i64, scratch_operands = 0 : i64, tpu.core_type = #tpu.core_type<tc>, window_params = [{transform_indices = @transform_0, window_bounds = array<i64: 16, 16>}, {pipeline_mode = #tpu.pipeline_mode<synchronous>, transform_indices = @transform_1, window_bounds = array<i64: 16, 128>}, {pipeline_mode = #tpu.pipeline_mode<synchronous>, transform_indices = @transform_2, window_bounds = array<i64: 2, 128>}, {transform_indices = @transform_3, window_bounds = array<i64: 16, 128>}, {transform_indices = @transform_4, window_bounds = array<i64: 16, 1>}, {transform_indices = @transform_5, window_bounds = array<i64: 16, 1>}]} {
    %c0 = arith.constant 0 : index
    %c0_0 = arith.constant 0 : index
    %0 = vector.load %arg1[%c0, %c0_0] : memref<16x16xf32, #tpu.memory_space<vmem>>, vector<16x16xf32>
    %1 = arith.truncf %0 : vector<16x16xf32> to vector<16x16xbf16>
    %c0_1 = arith.constant 0 : index
    %c0_2 = arith.constant 0 : index
    %2 = vector.load %arg2[%c0_1, %c0_2] : memref<16x128xf32, #tpu.memory_space<vmem>>, vector<16x128xf32>
    %3 = arith.truncf %2 : vector<16x128xf32> to vector<16x128xbf16>
    %cst = arith.constant dense<0.000000e+00> : vector<16x128xf32>
    %4 = tpu.matmul %1, %3, %cst {dimension_numbers = #tpu.dot_dimension_numbers<[1], [0], [0], [1], [0, 0, 1, 1], [], []>} : vector<16x16xbf16>, vector<16x128xbf16>, vector<16x128xf32> -> vector<16x128xf32>
    %c0_3 = arith.constant 0 : index
    %c0_4 = arith.constant 0 : index
    %5 = vector.load %arg3[%c0_3, %c0_4] : memref<2x128xf32, #tpu.memory_space<vmem>>, vector<2x128xf32>
    %6 = vector.extract_strided_slice %5 {offsets = [0, 0], sizes = [1, 128], strides = [1, 1]} : vector<2x128xf32> to vector<1x128xf32>
    %7 = vector.broadcast %6 : vector<1x128xf32> to vector<16x128xf32>
    %8 = arith.mulf %4, %7 : vector<16x128xf32>
    %cst_5 = arith.constant dense<0.000000e+00> : vector<16xf32>
    %9 = vector.multi_reduction <add>, %8, %cst_5 [1] : vector<16x128xf32> to vector<16xf32>
    %10 = vector.shape_cast %9 : vector<16xf32> to vector<16x1xf32>
    %c0_6 = arith.constant 0 : index
    %c0_7 = arith.constant 0 : index
    %11 = vector.load %arg5[%c0_6, %c0_7] : memref<16x1xf32, #tpu.memory_space<vmem>>, vector<16x1xf32>
    tpu.vector_store %arg5[%c0_6, %c0_7], %10 {strides = array<i32>} : memref<16x1xf32, #tpu.memory_space<vmem>>, vector<16x1xf32>,
    %12 = vector.extract_strided_slice %5 {offsets = [1, 0], sizes = [1, 128], strides = [1, 1]} : vector<2x128xf32> to vector<1x128xf32>
    %13 = vector.broadcast %12 : vector<1x128xf32> to vector<16x128xf32>
    %14 = arith.mulf %4, %13 : vector<16x128xf32>
    %cst_8 = arith.constant dense<0.000000e+00> : vector<16xf32>
    %15 = vector.multi_reduction <add>, %14, %cst_8 [1] : vector<16x128xf32> to vector<16xf32>
    %16 = vector.shape_cast %15 : vector<16xf32> to vector<16x1xf32>
    %c0_9 = arith.constant 0 : index
    %c0_10 = arith.constant 0 : index
    %17 = vector.load %arg6[%c0_9, %c0_10] : memref<16x1xf32, #tpu.memory_space<vmem>>, vector<16x1xf32>
    tpu.vector_store %arg6[%c0_9, %c0_10], %16 {strides = array<i32>} : memref<16x1xf32, #tpu.memory_space<vmem>>, vector<16x1xf32>,
    %18 = tpu.iota {dimensions = array<i32: 1>} : vector<16x128xi32>
    %c32_i32 = arith.constant 32 : i32
    %19 = vector.broadcast %c32_i32 : i32 to vector<16x128xi32>
    %20 = arith.cmpi eq, %18, %19 : vector<16x128xi32>
    %cst_11 = arith.constant 1.000000e+00 : f32
    %21 = vector.broadcast %cst_11 : f32 to vector<16x128xf32>
    %22 = arith.select %20, %21, %4 : vector<16x128xi1>, vector<16x128xf32>
    %23 = arith.truncf %22 : vector<16x128xf32> to vector<16x128xbf16>
    %c0_12 = arith.constant 0 : index
    %c0_13 = arith.constant 0 : index
    %24 = vector.load %arg4[%c0_12, %c0_13] : memref<16x128xbf16, #tpu.memory_space<vmem>>, vector<16x128xbf16>
    tpu.vector_store %arg4[%c0_12, %c0_13], %23 {strides = array<i32>} : memref<16x128xbf16, #tpu.memory_space<vmem>>, vector<16x128xbf16>,
    return
  }
  func.func @transform_0(%arg0: i32) -> (i32, i32) {
    %c0_i32 = arith.constant 0 : i32
    %c0_i32_0 = arith.constant 0 : i32
    return %arg0, %c0_i32 : i32, i32
  }
  func.func @transform_1(%arg0: i32) -> (i32, i32) {
    %c0_i32 = arith.constant 0 : i32
    %c0_i32_0 = arith.constant 0 : i32
    %c0_i32_1 = arith.constant 0 : i32
    return %c0_i32, %c0_i32_0 : i32, i32
  }
  func.func @transform_2(%arg0: i32) -> (i32, i32) {
    %c0_i32 = arith.constant 0 : i32
    %c0_i32_0 = arith.constant 0 : i32
    %c0_i32_1 = arith.constant 0 : i32
    return %c0_i32, %c0_i32_0 : i32, i32
  }
  func.func @transform_3(%arg0: i32) -> (i32, i32) {
    %c0_i32 = arith.constant 0 : i32
    %c0_i32_0 = arith.constant 0 : i32
    return %arg0, %c0_i32 : i32, i32
  }
  func.func @transform_4(%arg0: i32) -> (i32, i32) {
    %c0_i32 = arith.constant 0 : i32
    %c0_i32_0 = arith.constant 0 : i32
    return %arg0, %c0_i32 : i32, i32
  }
  func.func @transform_5(%arg0: i32) -> (i32, i32) {
    %c0_i32 = arith.constant 0 : i32
    %c0_i32_0 = arith.constant 0 : i32
    return %arg0, %c0_i32 : i32, i32
  }
}

</mosaic_0001>

<bundles_post_ra>
// kernel: tpu_custom_call.1
= control target key start
LH: loop header
LB: loop body
LE: loop exit
PB: predicated region body
PF: predicated region fallthrough
CT: control target
= control target key end

     0   :  { %11 = vsyncpa [#allocation3], 0  ;;  %s354_s0 = inlined_call_operand.hbm [shape: f32[16,16], index: 0, kind: input, shape index: {}]   ;;  %s355_s1 = inlined_call_operand.hbm [shape: f32[16,128], index: 1, kind: input, shape index: {}]   ;;  %s356_s2 = inlined_call_operand.vmem [shape: f32[2,128], index: 2, kind: input, shape index: {}]   ;;  %s357_s3 = inlined_call_operand.hbm [shape: bf16[16,128], index: 3, kind: output, shape index: {0}]   ;;  %s358_s4 = inlined_call_operand.vmem [shape: f32[16,1], index: 4, kind: output, shape index: {1}]   ;;  %s359_s5 = inlined_call_operand.vmem [shape: f32[16,1], index: 5, kind: output, shape index: {2}]  }
   0x1   :  { %12 = vsyncpa [#allocation6], 0 }
   0x2   :  { %13 = vsyncpa [#allocation4], 0  ;;  %s264_s18 = smov [#allocation2]   ;;  %s192_s22 = scalar_lea.hbm %s354_s0, 256 }
   0x3   :  { %s19_s19 = sshll.u32 %s264_s18, 4  ;;  %p193_p0 = scmp.ne.s32.totalorder %s354_s0, %s192_s22  ;;  %s20_s19 = int_to_ptr.vmem [resolvable:$true] %s19_s19 }
   0x4   :  { %p196_p1 = scmp.lt.u32.totalorder %s192_s22, %s354_s0 }
   0x6   :  { %p198_p2 = pnand %p196_p1, %p193_p0 }
   0x8   :  { %201 = shalt.err (!%p198_p2)
}
   0x9   :  { %s202_s27 = scalar_lea.vmem %s20_s19, 256  ;;  %p207_p4 = scmp.lt.s32.totalorder %s20_s19, %s20_s19 }
   0xa   :  { %p203_p3 = scmp.ne.s32.totalorder %s20_s19, %s202_s27  ;;  %p208_p5 = scmp.lt.s32.totalorder %s202_s27, %s202_s27 }
   0xc   :  { %p209_p6 = por %p208_p5, %p207_p4 }
   0xe   :  { %p210_p7 = pnand %p209_p6, %p203_p3 }
  0x10   :  { %213 = shalt.err (!%p210_p7)
}
  0x11   :  { %s265_s28 = smov 128   ;;  %s266_s29 = smov 8  }
  0x12   :  { %25 = dma.hbm_to_vmem [thread:$0]  %s354_s0, 256, %s20_s19, [#allocation3], %s265_s28, %s265_s28, %s266_s29  }
  0x13   :  { %s267_s7 = smov [#allocation5]   ;;  %s214_s11 = scalar_lea.hbm %s355_s1, 256 }
  0x14   :  { %s31_s8 = sshll.u32 %s267_s7, 4  ;;  %p215_p8 = scmp.ne.s32.totalorder %s355_s1, %s214_s11  ;;  %s32_s8 = int_to_ptr.vmem [resolvable:$true] %s31_s8 }
  0x15   :  { %p218_p9 = scmp.lt.u32.totalorder %s214_s11, %s355_s1 }
  0x17   :  { %p220_p10 = pnand %p218_p9, %p215_p8 }
  0x19   :  { %223 = shalt.err (!%p220_p10)
}
  0x1a   :  { %s224_s16 = scalar_lea.vmem %s32_s8, 256  ;;  %p229_p12 = scmp.lt.s32.totalorder %s32_s8, %s32_s8 }
  0x1b   :  { %p225_p11 = scmp.ne.s32.totalorder %s32_s8, %s224_s16  ;;  %p230_p13 = scmp.lt.s32.totalorder %s224_s16, %s224_s16 }
  0x1d   :  { %p231_p0 = por %p230_p13, %p229_p12 }
  0x1f   :  { %p232_p1 = pnand %p231_p0, %p225_p11 }
  0x21   :  { %235 = shalt.err (!%p232_p1)
}
  0x22   :  { %37 = dma.hbm_to_vmem [thread:$0]  %s355_s1, 256, %s32_s8, [#allocation6], %s265_s28, %s265_s28, %s266_s29  }
  0x23   :  { %258 = dma.done.wait [#allocation3], 256  }
  0x24   :  { %259 = vsyncadd [#allocation3], 4294967040 }
  0x25   :  { %260 = dma.done.wait [#allocation6], 256  }
  0x26   :  { %261 = vsyncadd [#allocation6], 4294967040  ;;  %v268_v0 = vmov 0.0   ;;  %vm269_vm0 = vmmov 0   ;;  %v50_v1 = vld [vmem:[#allocation5] sm:$0xff]  ;;  %v51_v2 = vld [vmem:[#allocation5 + $0x8] sm:$0xff]  ;;  %v99_v7 = vlaneseq }
  0x27   :  { %177 = vmatprep.subr.bf16.mxu0 %v268_v0  ;;  %179 = vmatprep.mubr.msk.bf16.mxu0 %vm269_vm0, %v268_v0  ;;  %v47_v3 = vld [vmem:[#allocation2] sm:$0xff]  ;;  %v52_v4 = vpack.c.bf16 %v51_v2, %v50_v1  ;;  %v48_v5 = vld [vmem:[#allocation2 + $0x8] sm:$0xff]  ;;  %vm53_vm1 = vcmask 130048  }
  0x28   :  { %v49_v6 = vpack.c.bf16 %v48_v5, %v47_v3  ;;  %v100_v8 = vshrl.u32 %v99_v7, 7  ;;  %v98_v11 = vld [vmem:[%s356_s2] sm:$0x3]  ;;  %v125_v12 = vand.u32 127, %v99_v7  ;;  %s270_s2 = smov [#allocation7]  }
  0x29   :  { %178 = vmatpush3.bf16.msra.mxu0 %v52_v4  ;;  %s144_s19 = sshll.u32 %s270_s2, 4  ;;  %s145_s19 = int_to_ptr.vmem [resolvable:$true] %s144_s19 }
  0x2a   :  { %v114_v9 = vsub.s32 1, %v100_v8  ;;  %v101_v10 = vsub.s32 0, %v100_v8  ;;  %vm126_vm2 = vcmp.eq.s32.totalorder %v125_v12, 32  ;;  %s236_s20 = scalar_lea.vmem %s145_s19, 128  ;;  %p241_p3 = scmp.lt.s32.totalorder %s145_s19, %s145_s19 }
  0x2b   :  { %p237_p2 = scmp.ne.s32.totalorder %s145_s19, %s236_s20  ;;  %p242_p4 = scmp.lt.s32.totalorder %s236_s20, %s236_s20 }
  0x2c   :  { %180 = vmatmul.mubr.msk.bf16.vlgmr.msra.gmra.mrb[0].mxu0 %vm53_vm1, %v49_v6  ;;  %v115_v13 = vrot.slane %v98_v11, %v114_v9  ;;  %v102_v14 = vrot.slane %v98_v11, %v101_v10 }
  0x2d   :  { %p243_p5 = por %p242_p4, %p241_p3 }
  0x2f   :  { %p244_p6 = pnand %p243_p5, %p237_p2 }
  0xff   :  { %v91_v15 = vpop.f32.mrb[0].mxu0 }
 0x100   :  { %v181_v16 = vpop.f32.mrb[1].mxu0  ;;  %v116_v17 = vmul.f32 %v115_v13, %v91_v15  ;;  %v103_v18 = vmul.f32 %v102_v14, %v91_v15  ;;  %v127_v20 = vsel %vm126_vm2, 1.0, %v91_v15 }
 0x101   :  { %v94_v19 = vpop.f32.mrb[2].mxu0 }
 0x102   :  { %v128_v21 = vsel %vm126_vm2, 1.0, %v94_v19  ;;  %118 = vadd.xlane.f32.xlu1 %v116_v17  ;;  %105 = vadd.xlane.f32.xlu0 %v103_v18  ;;  %v182_v22 = vpop.f32.mrb[3].mxu0  ;;  %v117_v24 = vmul.f32 %v115_v13, %v94_v19  ;;  %v104_v25 = vmul.f32 %v102_v14, %v94_v19 }
 0x103   :  { %v173_v23 = vpack.c.bf16 %v128_v21, %v127_v20 }
 0x105   :  { %174 = vst [vmem:[#allocation7] sm:$0xff] %v173_v23  }
 0x106   :  { %120 = vadd.xlane.f32.xlu1 %v117_v24  ;;  %107 = vadd.xlane.f32.xlu0 %v104_v25 }
 0x107   :  { %247 = shalt.err (!%p244_p6)
}
 0x108   :  { %s248_s23 = scalar_lea.hbm %s357_s3, 128 }
 0x109   :  { %p249_p7 = scmp.ne.s32.totalorder %s357_s3, %s248_s23  ;;  %p252_p8 = scmp.lt.u32.totalorder %s248_s23, %s357_s3 }
 0x10b   :  { %p254_p9 = pnand %p252_p8, %p249_p7 }
 0x10d   :  { %257 = shalt.err (!%p254_p9)
}
 0x10e   :  { %s271_s28 = smov 64   ;;  %s272_s29 = smov 4   ;;  %vm109_vm3 = vcmask 7168  }
 0x10f   :  { %150 = dma.vmem_to_hbm [thread:$0]  %s145_s19, 128, %s357_s3, [#allocation4], %s271_s28, %s271_s28, %s272_s29  }
 0x18f   :  { %v119_v26 = vpop.xlane.xlu1 %118  ;;  %v106_v27 = vpop.xlane.xlu0 %105 }
 0x190   :  { %122 = vst.msk [vmem:[%s359_s5] sm:$0xff] %vm109_vm3, %v119_v26  ;;  %110 = vst.msk [vmem:[%s358_s4] sm:$0xff] %vm109_vm3, %v106_v27 }
 0x193   :  { %v121_v28 = vpop.xlane.xlu1 %120  ;;  %v108_v29 = vpop.xlane.xlu0 %107 }
 0x194   :  { %123 = vst.msk [vmem:[%s359_s5 + $0x8] sm:$0xff] %vm109_vm3, %v121_v28  ;;  %111 = vst.msk [vmem:[%s358_s4 + $0x8] sm:$0xff] %vm109_vm3, %v108_v29 }
 0x195   :  { %262 = dma.done.wait [#allocation4], 128  }
 0x196   :  { %263 = vsyncadd [#allocation4], 4294967168 }
 0x197   :  { %162 = vsyncpa [#allocation3], 1 }
 0x198   :  { %163 = vsyncpa [#allocation6], 1 }
 0x199   :  { %164 = vsyncpa [#allocation4], 1 }

</bundles_post_ra>
